<compile_context>
chip_gen: v6e
topology: v6e:2x2x1
jax: 0.10.0
libtpu: 0.0.40
codegen_flags: <defaults>
</compile_context>

<pallas_src>
import functools
import math

import jax
import jax.numpy as jnp
from jax.experimental import pallas as pl
from jax.experimental.pallas import tpu as pltpu

LN_EPS = 1e-5


def _round_up(x, n):
    return ((x + n - 1) // n) * n


def _ff_kernel(*refs, num_layers, res_ln, packed_ln):
    # refs = (x_ref, w0, b0, w1, b1, ..., [seg_avg_ref], o_ref)
    x_ref = refs[0]
    o_ref = refs[-1]
    param_refs = refs[1:1 + 2 * num_layers]
    s_ref = refs[1 + 2 * num_layers] if (res_ln and packed_ln) else None

    x = x_ref[...]
    for i in range(num_layers):
        w = param_refs[2 * i][...]                              # storage dtype
        b = param_refs[2 * i + 1][...].astype(jnp.float32)      # (1, out)
        # MXU in the weight storage dtype (bf16 on v6e/v7x), f32 accumulation.
        x = jnp.dot(x.astype(w.dtype), w,
                    preferred_element_type=jnp.float32) + b
        if i != num_layers - 1:
            x = jnp.maximum(x, 0.0)                             # f32 VPU (v5e-safe)

    if res_ln:
        # Re-read the input tile for the residual (keeps live ranges short).
        x = x + x_ref[...].astype(jnp.float32)
        if packed_ln:
            # Packed layout: each row holds G independent feature segments.
            # s_ref is block_diag(ones(d,d)/d) so x @ s gives per-segment means
            # broadcast across that segment's lanes (all lane-dense, MXU slot).
            s = s_ref[...]
            mu = jnp.dot(x, s, preferred_element_type=jnp.float32)
            var = jnp.dot((x - mu) * (x - mu), s,
                          preferred_element_type=jnp.float32)
        else:
            mu = jnp.mean(x, axis=-1, keepdims=True)
            var = jnp.mean((x - mu) * (x - mu), axis=-1, keepdims=True)
        x = (x - mu) * jax.lax.rsqrt(var + LN_EPS)

    o_ref[...] = x.astype(o_ref.dtype)


def feed_forward(inputs, weights, biases, *, res_ln=False, tm=512):
    """Applies the FeedForward stack.

    inputs : [..., fea[0]]
    weights: list of (fea[i], fea[i+1]) arrays  (already transposed vs torch)
    biases : list of (fea[i+1],) arrays
    """
    num_layers = len(weights)
    orig_shape = inputs.shape
    d_in = orig_shape[-1]
    d_out = weights[-1].shape[-1]
    if res_ln:
        assert d_in == d_out, "residual requires matching in/out feature dims"

    x2d = inputs.reshape(-1, d_in)
    m = x2d.shape[0]

    # ---- lane packing: make the output last dim a multiple of 128 lanes ----
    g = 1
    if d_out % 128 != 0 and m > 0:
        cand = 128 // math.gcd(128, d_out)
        packed_bytes = sum(cand * cand * w.size * w.dtype.itemsize
                           for w in weights)
        if cand > 1 and m % cand == 0 and packed_bytes <= (4 << 20):
            g = cand

    if g > 1:
        x2d = x2d.reshape(m // g, g * d_in)               # free, row-major
        ws = [jnp.kron(jnp.eye(g, dtype=w.dtype), w) for w in weights]
        bs = [jnp.tile(b, g).reshape(1, -1) for b in biases]
    else:
        ws = list(weights)
        bs = [b.reshape(1, -1) for b in biases]

    m_rows, width_in = x2d.shape
    width_out = g * d_out

    # ---- row tile: as big as possible, but keep >=2 grid steps (megacore) ----
    tm_eff = max(8, min(tm, _round_up(pl.cdiv(max(m_rows, 1), 2), 8)))
    grid = (pl.cdiv(max(m_rows, 1), tm_eff),)

    in_specs = [pl.BlockSpec((tm_eff, width_in), lambda i: (i, 0))]
    operands = [x2d]
    for w, b in zip(ws, bs):
        in_specs.append(pl.BlockSpec(w.shape, lambda i: (0, 0)))
        in_specs.append(pl.BlockSpec(b.shape, lambda i: (0, 0)))
        operands.append(w)
        operands.append(b)

    packed_ln = bool(res_ln and g > 1)
    if packed_ln:
        seg_avg = jnp.kron(jnp.eye(g, dtype=jnp.float32),
                           jnp.full((d_out, d_out), 1.0 / d_out, jnp.float32))
        in_specs.append(pl.BlockSpec(seg_avg.shape, lambda i: (0, 0)))
        operands.append(seg_avg)

    kernel = functools.partial(_ff_kernel, num_layers=num_layers,
                               res_ln=res_ln, packed_ln=packed_ln)

    out2d = pl.pallas_call(
        kernel,
        out_shape=jax.ShapeDtypeStruct((m_rows, width_out), inputs.dtype),
        grid_spec=pltpu.PrefetchScalarGridSpec(
            num_scalar_prefetch=0,
            grid=grid,
            in_specs=in_specs,
            out_specs=pl.BlockSpec((tm_eff, width_out), lambda i: (i, 0)),
        ),
        compiler_params=pltpu.CompilerParams(
            dimension_semantics=("parallel",)),
    )(*operands)

    if g > 1:
        out2d = out2d.reshape(m, d_out)                   # free, row-major
    return out2d.reshape(*orig_shape[:-1], d_out)


def init_params(key, fea):
    """Deterministic PyTorch-Linear-style init (uniform +/- 1/sqrt(fan_in))."""
    weights, biases = [], []
    for i in range(len(fea) - 1):
        key, kw, kb = jax.random.split(key, 3)
        bound = 1.0 / math.sqrt(fea[i])
        # store transposed: (in, out)
        w = jax.random.uniform(kw, (fea[i], fea[i + 1]), jnp.float32, -bound, bound)
        b = jax.random.uniform(kb, (fea[i + 1],), jnp.float32, -bound, bound)
        weights.append(w)
        biases.append(b)
    return weights, biases


def _reference(inputs, weights, biases, res_ln):
    x = inputs.astype(jnp.float32)
    for i, (w, b) in enumerate(zip(weights, biases)):
        x = x @ w.astype(jnp.float32) + b.astype(jnp.float32)
        if i != len(weights) - 1:
            x = jnp.maximum(x, 0.0)
    if res_ln:
        x = x + inputs.astype(jnp.float32)
        mu = jnp.mean(x, axis=-1, keepdims=True)
        var = jnp.mean((x - mu) ** 2, axis=-1, keepdims=True)
        x = (x - mu) / jnp.sqrt(var + LN_EPS)
    return x


if __name__ == "__main__":
    key = jax.random.PRNGKey(0)
    # STWave-style input: [batch, time, nodes, features]
    B, T, N, D = 2, 8, 16, 32
    key, kx = jax.random.split(key)
    x = jax.random.normal(kx, (B, T, N, D), jnp.float32)

    # 1) Linear(32->64) -> ReLU -> Linear(64->32) + residual LayerNorm, f32,
    #    small feature dims => lane-packed (G=4) path.
    fea1 = [D, 64, D]
    w1, b1 = init_params(jax.random.PRNGKey(1), fea1)
    out1 = jax.block_until_ready(feed_forward(x, w1, b1, res_ln=True))
    ref1 = _reference(x, w1, b1, True)
    assert out1.shape == (B, T, N, D)
    assert jnp.allclose(out1, ref1, atol=1e-3, rtol=1e-3)

    # 2) Same stack with bf16 storage / bf16 MXU operands (v6e/v7x path).
    xb = x.astype(jnp.bfloat16)
    w1b = [w.astype(jnp.bfloat16) for w in w1]
    b1b = [b.astype(jnp.bfloat16) for b in b1]
    out2 = jax.block_until_ready(feed_forward(xb, w1b, b1b, res_ln=True))
    assert out2.dtype == jnp.bfloat16
    assert jnp.allclose(out2.astype(jnp.float32), ref1, atol=1.5e-1, rtol=1.5e-1)

    # 3) Already lane-dense feature dims (128/256/128) => unpacked (G=1) path.
    fea3 = [128, 256, 128]
    key, kx3 = jax.random.split(key)
    x3 = jax.random.normal(kx3, (B, T, N, 128), jnp.float32)
    w3, b3 = init_params(jax.random.PRNGKey(3), fea3)
    out3 = jax.block_until_ready(feed_forward(x3, w3, b3, res_ln=True))
    ref3 = _reference(x3, w3, b3, True)
    assert jnp.allclose(out3, ref3, atol=1e-3, rtol=1e-3)

    # 4) No residual/LN, d_out != d_in (32 -> 64 -> 48), packed (G=8) path.
    fea4 = [D, 64, 48]
    w4, b4 = init_params(jax.random.PRNGKey(4), fea4)
    out4 = jax.block_until_ready(feed_forward(x, w4, b4, res_ln=False))
    ref4 = _reference(x, w4, b4, False)
    assert out4.shape == (B, T, N, 48)
    assert jnp.allclose(out4, ref4, atol=1e-3, rtol=1e-3)

    print("KERNEL_OK")
</pallas_src>

<mosaic_0001>
module attributes {stable_mosaic.version = 11 : i64} {
  func.func @_ff_kernel(%arg0: i32, %arg1: memref<32x128xf32, #tpu.memory_space<vmem>>, %arg2: memref<128x256xf32, #tpu.memory_space<vmem>>, %arg3: memref<1x256xf32, #tpu.memory_space<vmem>>, %arg4: memref<256x128xf32, #tpu.memory_space<vmem>>, %arg5: memref<1x128xf32, #tpu.memory_space<vmem>>, %arg6: memref<128x128xf32, #tpu.memory_space<vmem>>, %arg7: memref<32x128xf32, #tpu.memory_space<vmem>>) attributes {dimension_semantics = [#tpu.dimension_semantics<parallel>], iteration_bounds = array<i64: 2>, scalar_prefetch = 0 : i64, scratch_operands = 0 : i64, tpu.core_type = #tpu.core_type<tc>, window_params = [{transform_indices = @transform_0, window_bounds = array<i64: 32, 128>}, {pipeline_mode = #tpu.pipeline_mode<synchronous>, transform_indices = @transform_1, window_bounds = array<i64: 128, 256>}, {pipeline_mode = #tpu.pipeline_mode<synchronous>, transform_indices = @transform_2, window_bounds = array<i64: 1, 256>}, {pipeline_mode = #tpu.pipeline_mode<synchronous>, transform_indices = @transform_3, window_bounds = array<i64: 256, 128>}, {pipeline_mode = #tpu.pipeline_mode<synchronous>, transform_indices = @transform_4, window_bounds = array<i64: 1, 128>}, {pipeline_mode = #tpu.pipeline_mode<synchronous>, transform_indices = @transform_5, window_bounds = array<i64: 128, 128>}, {transform_indices = @transform_6, window_bounds = array<i64: 32, 128>}]} {
    %c0 = arith.constant 0 : index
    %c0_0 = arith.constant 0 : index
    %0 = vector.load %arg1[%c0, %c0_0] : memref<32x128xf32, #tpu.memory_space<vmem>>, vector<32x128xf32>
    %c0_1 = arith.constant 0 : index
    %c0_2 = arith.constant 0 : index
    %1 = vector.load %arg2[%c0_1, %c0_2] : memref<128x256xf32, #tpu.memory_space<vmem>>, vector<128x256xf32>
    %c0_3 = arith.constant 0 : index
    %c0_4 = arith.constant 0 : index
    %2 = vector.load %arg3[%c0_3, %c0_4] : memref<1x256xf32, #tpu.memory_space<vmem>>, vector<1x256xf32>
    %cst = arith.constant dense<0.000000e+00> : vector<32x256xf32>
    %3 = tpu.matmul %0, %1, %cst {dimension_numbers = #tpu.dot_dimension_numbers<[1], [0], [0], [1], [0, 0, 1, 1], [], []>} : vector<32x128xf32>, vector<128x256xf32>, vector<32x256xf32> -> vector<32x256xf32>
    %4 = vector.broadcast %2 : vector<1x256xf32> to vector<32x256xf32>
    %5 = arith.addf %3, %4 : vector<32x256xf32>
    %cst_5 = arith.constant 0.000000e+00 : f32
    %6 = vector.broadcast %cst_5 : f32 to vector<32x256xf32>
    %7 = arith.maximumf %5, %6 : vector<32x256xf32>
    %c0_6 = arith.constant 0 : index
    %c0_7 = arith.constant 0 : index
    %8 = vector.load %arg4[%c0_6, %c0_7] : memref<256x128xf32, #tpu.memory_space<vmem>>, vector<256x128xf32>
    %c0_8 = arith.constant 0 : index
    %c0_9 = arith.constant 0 : index
    %9 = vector.load %arg5[%c0_8, %c0_9] : memref<1x128xf32, #tpu.memory_space<vmem>>, vector<1x128xf32>
    %cst_10 = arith.constant dense<0.000000e+00> : vector<32x128xf32>
    %10 = tpu.matmul %7, %8, %cst_10 {dimension_numbers = #tpu.dot_dimension_numbers<[1], [0], [0], [1], [0, 0, 1, 1], [], []>} : vector<32x256xf32>, vector<256x128xf32>, vector<32x128xf32> -> vector<32x128xf32>
    %11 = vector.broadcast %9 : vector<1x128xf32> to vector<32x128xf32>
    %12 = arith.addf %10, %11 : vector<32x128xf32>
    %c0_11 = arith.constant 0 : index
    %c0_12 = arith.constant 0 : index
    %13 = vector.load %arg1[%c0_11, %c0_12] : memref<32x128xf32, #tpu.memory_space<vmem>>, vector<32x128xf32>
    %14 = arith.addf %12, %13 : vector<32x128xf32>
    %c0_13 = arith.constant 0 : index
    %c0_14 = arith.constant 0 : index
    %15 = vector.load %arg6[%c0_13, %c0_14] : memref<128x128xf32, #tpu.memory_space<vmem>>, vector<128x128xf32>
    %cst_15 = arith.constant dense<0.000000e+00> : vector<32x128xf32>
    %16 = tpu.matmul %14, %15, %cst_15 {dimension_numbers = #tpu.dot_dimension_numbers<[1], [0], [0], [1], [0, 0, 1, 1], [], []>} : vector<32x128xf32>, vector<128x128xf32>, vector<32x128xf32> -> vector<32x128xf32>
    %17 = arith.subf %14, %16 : vector<32x128xf32>
    %18 = arith.subf %14, %16 : vector<32x128xf32>
    %19 = arith.mulf %17, %18 : vector<32x128xf32>
    %cst_16 = arith.constant dense<0.000000e+00> : vector<32x128xf32>
    %20 = tpu.matmul %19, %15, %cst_16 {dimension_numbers = #tpu.dot_dimension_numbers<[1], [0], [0], [1], [0, 0, 1, 1], [], []>} : vector<32x128xf32>, vector<128x128xf32>, vector<32x128xf32> -> vector<32x128xf32>
    %21 = arith.subf %14, %16 : vector<32x128xf32>
    %cst_17 = arith.constant 9.99999974E-6 : f32
    %22 = vector.broadcast %cst_17 : f32 to vector<32x128xf32>
    %23 = arith.addf %20, %22 : vector<32x128xf32>
    %24 = math.rsqrt %23 : vector<32x128xf32>
    %25 = arith.mulf %21, %24 : vector<32x128xf32>
    %c0_18 = arith.constant 0 : index
    %c0_19 = arith.constant 0 : index
    %26 = vector.load %arg7[%c0_18, %c0_19] : memref<32x128xf32, #tpu.memory_space<vmem>>, vector<32x128xf32>
    tpu.vector_store %arg7[%c0_18, %c0_19], %25 {strides = array<i32>} : memref<32x128xf32, #tpu.memory_space<vmem>>, vector<32x128xf32>,
    return
  }
  func.func @transform_0(%arg0: i32) -> (i32, i32) {
    %c0_i32 = arith.constant 0 : i32
    %c0_i32_0 = arith.constant 0 : i32
    return %arg0, %c0_i32 : i32, i32
  }
  func.func @transform_1(%arg0: i32) -> (i32, i32) {
    %c0_i32 = arith.constant 0 : i32
    %c0_i32_0 = arith.constant 0 : i32
    %c0_i32_1 = arith.constant 0 : i32
    return %c0_i32, %c0_i32_0 : i32, i32
  }
  func.func @transform_2(%arg0: i32) -> (i32, i32) {
    %c0_i32 = arith.constant 0 : i32
    %c0_i32_0 = arith.constant 0 : i32
    %c0_i32_1 = arith.constant 0 : i32
    return %c0_i32, %c0_i32_0 : i32, i32
  }
  func.func @transform_3(%arg0: i32) -> (i32, i32) {
    %c0_i32 = arith.constant 0 : i32
    %c0_i32_0 = arith.constant 0 : i32
    %c0_i32_1 = arith.constant 0 : i32
    return %c0_i32, %c0_i32_0 : i32, i32
  }
  func.func @transform_4(%arg0: i32) -> (i32, i32) {
    %c0_i32 = arith.constant 0 : i32
    %c0_i32_0 = arith.constant 0 : i32
    %c0_i32_1 = arith.constant 0 : i32
    return %c0_i32, %c0_i32_0 : i32, i32
  }
  func.func @transform_5(%arg0: i32) -> (i32, i32) {
    %c0_i32 = arith.constant 0 : i32
    %c0_i32_0 = arith.constant 0 : i32
    %c0_i32_1 = arith.constant 0 : i32
    return %c0_i32, %c0_i32_0 : i32, i32
  }
  func.func @transform_6(%arg0: i32) -> (i32, i32) {
    %c0_i32 = arith.constant 0 : i32
    %c0_i32_0 = arith.constant 0 : i32
    return %arg0, %c0_i32 : i32, i32
  }
}

</mosaic_0001>

<bundles_post_ra>
// kernel: tpu_custom_call.1
= control target key start
LH: loop header
LB: loop body
LE: loop exit
PB: predicated region body
PF: predicated region fallthrough
CT: control target
= control target key end

     0   :  { %11 = vsyncpa [#allocation3], 0  ;;  %s1682_s0 = inlined_call_operand.hbm [shape: f32[64,128], index: 0, kind: input, shape index: {}]   ;;  %s1683_s1 = inlined_call_operand.hbm [shape: f32[128,256], index: 1, kind: input, shape index: {}]   ;;  %s1684_s2 = inlined_call_operand.vmem [shape: f32[1,256], index: 2, kind: input, shape index: {}]   ;;  %s1685_s3 = inlined_call_operand.hbm [shape: f32[256,128], index: 3, kind: input, shape index: {}]   ;;  %s1686_s4 = inlined_call_operand.vmem [shape: f32[1,128], index: 4, kind: input, shape index: {}]   ;;  %s1687_s5 = inlined_call_operand.hbm [shape: f32[128,128], index: 5, kind: input, shape index: {}]   ;;  %s1688_s6 = inlined_call_operand.hbm [shape: f32[64,128], index: 6, kind: output, shape index: {}]  }
   0x1   :  { %13 = vsyncpa [#allocation3 + $0x1], 0 }
   0x2   :  { %14 = vsyncpa [#allocation6], 0 }
   0x3   :  { %15 = vsyncpa [#allocation9], 0 }
   0x4   :  { %16 = vsyncpa [#allocation4], 0 }
   0x5   :  { %18 = vsyncpa [#allocation4 + $0x1], 0  ;;  %s1413_s21 = smov 0   ;;  %s1415_s22 = smov 0  }
   0x6   :  { %s1417_s23 = smov 0   ;;  %s1419_s24 = smov 0  }
   0x7 LB: > { %s1434_s25 = sadd.s32 4294967295, %s1364_s24   ;;  %s911_s26 = sadd.s32 4294967294, %s1364_s24   ;;  %s1364_s24 = sphi %s1419_s24, %s1716_s24   ;;  %s1360_s23 = sphi %s1417_s23, %s1715_s23   ;;  %s1356_s22 = sphi %s1415_s22, %s1714_s22   ;;  %s1352_s21 = sphi %s1413_s21, %s1713_s21  }
   0x8   : > { %p44_p0 = scmp.ne.s32.totalorder %s1356_s22, %s1352_s21  ;;  %p1689_p1 = scmp.eq.s32.totalorder %s1434_s25, 0 }
   0x9   : > { %p179_p3 = scmp.eq.s32.totalorder %s911_s26, 1  ;;  %p912_p5 = scmp.ge.s32.totalorder %s1364_s24, 1 }
   0xa   : > { %p1443_p4 = por %p1689_p1, %p44_p0  ;;  %p186_p7 = scmp.lt.s32.totalorder %s1364_s24, 3 }
   0xb   : > { %p1448_p6 = por %p179_p3, %p44_p0  ;;  %s1366_s30 = smov [#allocation5]  }
   0xc   : > { %s1695_s27 = scalar_select %p1443_p4, 1, 0 }
   0xd   : > { %s1696_s28 = scalar_select %p1448_p6, 1, 0 }
   0xe   : > { %p1453_p8 = pnand %p912_p5, %p186_p7  ;;  %s198_s7 = sshll.u32 %s1366_s30, 4  ;;  %s199_s7 = int_to_ptr.vmem [resolvable:$true] %s198_s7 }
   0xf   : > { %s1367_s9 = smov [#allocation7]   ;;  %s1197_s11 = scalar_lea.vmem %s199_s7, 4096 }
  0x10   : > { %s1697_s29 = scalar_select %p1453_p8, 1, 0 }
  0x11   : > { %p1110_p9 = pneg %p1453_p8  ;;  %s214_s10 = sshll.u32 %s1367_s9, 4  ;;  %s215_s10 = int_to_ptr.vmem [resolvable:$true] %s214_s10 }
  0x12   : > { %p1198_p13 = scmp.ne.s32.totalorder %s199_s7, %s1197_s11  ;;  %p1205_p5 = scmp.lt.s32.totalorder %s199_s7, %s199_s7 }
  0x13   : > { %p1462_p11 = pnand %p1110_p9, %p1689_p1  ;;  %p1206_p7 = scmp.lt.s32.totalorder %s1197_s11, %s1197_s11 }
  0x15   : > { %p1188_p12 = pneg %p1462_p11  ;;  %p1207_p10 = por %p1206_p7, %p1205_p5 }
  0x17   : > { %p1200_p0 = pnand %p1198_p13, %p1188_p12 }
  0x19   : > { %p1201_p3 = pneg %p1200_p0 }
  0x1b   : > { %p1208_p9 = pnand %p1207_p10, %p1201_p3 }
  0x1d   : > { %1211 = shalt.err (!%p1208_p9)
}
  0x1e   : > { %s1368_s12 = smov 256   ;;  %s1369_s13 = smov 16  }
  0x1f   : > { %1113 = dma.hbm_to_vmem [thread:$0]  (!%p1462_p11), %s1683_s1, 4096, %s199_s7, [#allocation6], %s1368_s12, %s1368_s12, %s1369_s13  }
  0x20   : > { %s1223_s16 = scalar_lea.vmem %s215_s10, 4096  ;;  %p1231_p2 = scmp.lt.s32.totalorder %s215_s10, %s215_s10 }
  0x21   : > { %p1224_p1 = scmp.ne.s32.totalorder %s215_s10, %s1223_s16  ;;  %p1232_p6 = scmp.lt.s32.totalorder %s1223_s16, %s1223_s16 }
  0x23   : > { %p1226_p13 = pnand %p1224_p1, %p1188_p12  ;;  %p1233_p5 = por %p1232_p6, %p1231_p2 }
  0x25   : > { %p1227_p0 = pneg %p1226_p13 }
  0x27   : > { %p1234_p10 = pnand %p1233_p5, %p1227_p0 }
  0x29   : > { %1237 = shalt.err (!%p1234_p10)
}
  0x2a   : > { %s1690_s17 = smov 128   ;;  %s1691_s18 = smov 8  }
  0x2b   : > { %1116 = dma.hbm_to_vmem [thread:$0]  (!%p1462_p11), %s1685_s3, 4096, %s215_s10, [#allocation6], %s1690_s17, %s1690_s17, %s1691_s18  }
  0x2c   : > { %s1372_s26 = smov [#allocation8]   ;;  %s1488_s7 = sadd.s32 1, %s1364_s24  }
  0x2d   : > { %s230_s30 = sshll.u32 %s1372_s26, 4  ;;  %s231_s30 = int_to_ptr.vmem [resolvable:$true] %s230_s30 }
  0x2e   : > { %s1249_s9 = scalar_lea.vmem %s231_s30, 2048  ;;  %p1257_p3 = scmp.lt.s32.totalorder %s231_s30, %s231_s30 }
  0x2f   : > { %p1250_p1 = scmp.ne.s32.totalorder %s231_s30, %s1249_s9  ;;  %p1258_p7 = scmp.lt.s32.totalorder %s1249_s9, %s1249_s9 }
  0x31   : > { %p1252_p2 = pnand %p1250_p1, %p1188_p12  ;;  %p1259_p9 = por %p1258_p7, %p1257_p3 }
  0x33   : > { %p1253_p6 = pneg %p1252_p2 }
  0x35   : > { %p1260_p13 = pnand %p1259_p9, %p1253_p6 }
  0x37   : > { %1263 = shalt.err (!%p1260_p13)
}
  0x38   : > { %1119 = dma.hbm_to_vmem [thread:$0]  (!%p1462_p11), %s1687_s5, 2048, %s231_s30, [#allocation9], %s1690_s17, %s1690_s17, %s1691_s18  }
  0x39   : > { %s28_s12 = ssub.s32 %s1364_s24, %s1488_s7  ;;  %s31_s8 = sadd.s32 1, %s1360_s23 }
  0x3a   : > { %p29_p12 = scmp.eq.s32.totalorder %s28_s12, 0  ;;  %p38_p0 = scmp.ne.s32.totalorder %s1360_s23, %s1356_s22 }
  0x3b   : > { %p39_p5 = scmp.eq.s32.totalorder %s1364_s24, 0  ;;  %p1131_p10 = scmp.lt.s32.totalorder %s1364_s24, 2 }
  0x3c   : > { %s1509_s13 = scalar_select %p29_p12, %s1360_s23, %s31_s8  }
  0x3d   : > { %p40_p1 = por %p39_p5, %p38_p0  ;;  %p1699_p2 = scmp.eq.s32.totalorder %s1434_s25, 1 }
  0x3e   : > { %s244_s15 = sand.u32 1, %s1360_s23   ;;  %s932_s16 = sshll.u32 %s1364_s24, 9 }
  0x3f   : > { %p1513_p6 = por %p1699_p2, %p38_p0  ;;  %s917_s19 = sshll.u32 %s244_s15, 5 }
  0x40   : > { %s1522_s30 = scalar_lea.hbm %s1682_s0, %s932_s16  ;;  %s248_s9 = scalar_lea.vmem [#allocation2], %s917_s19 }
  0x41   : > { %s1700_s14 = scalar_select %p1513_p6, 1, 0 }
  0x42   : > { %s255_s10 = sshll.u32 %s248_s9, 4  ;;  %p1524_p11 = pnand %p1131_p10, %p40_p1  ;;  %s1528_s10 = int_to_ptr.vmem [resolvable:$true] %s255_s10 }
  0x43   : > { %s1530_s12 = scalar_lea.sflag [#allocation3], %s244_s15  ;;  %s1264_s8 = scalar_lea.hbm %s1522_s30, 512 }
  0x44   : > { %p1265_p3 = scmp.ne.s32.totalorder %s1522_s30, %s1264_s8  ;;  %p1266_p7 = pneg %p1524_p11 }
  0x45   : > { %s1269_s19 = scalar_lea.hbm %s1682_s0, 1024  ;;  %p1270_p12 = scmp.lt.s32.totalorder %s1522_s30, %s1682_s0 }
  0x46   : > { %p1267_p9 = pnand %p1266_p7, %p1265_p3  ;;  %p1271_p0 = scmp.lt.s32.totalorder %s1269_s19, %s1264_s8 }
  0x48   : > { %p1268_p13 = pneg %p1267_p9  ;;  %p1272_p5 = por %p1271_p0, %p1270_p12 }
  0x4a   : > { %p1273_p10 = pnand %p1272_p5, %p1268_p13 }
  0x4c   : > { %1276 = shalt.err (!%p1273_p10)
}
  0x4d   : > { %s1277_s15 = scalar_lea.vmem %s1528_s10, 512  ;;  %s1373_s17 = smov [#allocation2]  }
  0x4e   : > { %p1278_p1 = scmp.ne.s32.totalorder %s1528_s10, %s1277_s15  ;;  %s1282_s18 = sshll.u32 %s1373_s17, 4  ;;  %s1283_s18 = int_to_ptr.vmem [resolvable:$false] %s1282_s18 }
  0x4f   : > { %s1284_s16 = scalar_lea.vmem %s1283_s18, 1024  ;;  %p1285_p9 = scmp.lt.s32.totalorder %s1528_s10, %s1283_s18 }
  0x50   : > { %p1280_p2 = pnand %p1278_p1, %p1266_p7  ;;  %p1286_p6 = scmp.lt.s32.totalorder %s1284_s16, %s1277_s15 }
  0x52   : > { %p1281_p3 = pneg %p1280_p2  ;;  %p1287_p4 = por %p1286_p6, %p1285_p9 }
  0x54   : > { %p1288_p8 = pnand %p1287_p4, %p1281_p3 }
  0x56   : > { %1291 = shalt.err (!%p1288_p8)
}
  0x57   : > { %s1702_s8 = smov 8   ;;  %s1703_s20 = smov 128  }
  0x58   : > { %1123 = dma.hbm_to_vmem [thread:$0]  (!%p1524_p11), %s1522_s30, 512, %s1528_s10, %s1530_s12, %s1703_s20, %s1703_s20, %s1702_s8  }
  0x59   : > { %p1704_p7 = scmp.ne.s32.totalorder %s1697_s29, 0 }
  0x5a   : > { %s1557_s17 = sand.u32 (!%p1704_p7), 1, %s1356_s22   ;;  %p1705_p4 = scmp.ne.s32.totalorder (!%p1704_p7), %s1695_s27, 0 }
  0x5b   : > { %267 = sbr.rel (%p1704_p7) target bundleno = 977 (0x3d1), region = 44  ;;  %s921_s18 = sshll.u32 (!%p1704_p7), %s1557_s17, 5 }
  0x5c   : > { %s270_s19 = scalar_lea.sflag (!%p1704_p7), [#allocation3], %s1557_s17  ;;  %s1563_s11 = scalar_lea.vmem (!%p1704_p7), [#allocation2], %s921_s18 }
  0x60   : > { %1335 = dma.done.wait (%p1705_p4), %s270_s19, 512  }
  0x61   : > { %1337 = vsyncadd (%p1705_p4), %s270_s19, 4294966784  ;;  %p1706_p8 = scmp.eq.s32.totalorder %s1434_s25, 0 }
  0x63   : > { %1339 = dma.done.wait (%p1706_p8), [#allocation6], 8192   ;;  %p1707_p6 = pmov %p1706_p8 }
  0x65   : > { %1341 = vsyncadd (%p1707_p6), [#allocation6], 4294959104  ;;  %p1708_p11 = pmov %p1707_p6 }
  0x66   : > { %p1709_p13 = pmov %p1707_p6 }
  0x67   : > { %1343 = dma.done.wait (%p1708_p11), [#allocation9], 2048  }
  0x68   : > { %1345 = vsyncadd (%p1709_p13), [#allocation9], 4294965248  ;;  %v1374_v0 = vmov 0.0   ;;  %v351_v1 = vld [vmem:[#allocation5 + $0xf8] sm:$0xff]  ;;  %v350_v2 = vld [vmem:[#allocation5 + $0xf0] sm:$0xff]  ;;  %s313_s12 = scalar_lea.vmem [#allocation10], %s921_s18 }
  0x69   : > { %428 = vmatprep.mubr.f32.mxu0 %v1374_v0  ;;  %v349_v3 = vld [vmem:[#allocation5 + $0xe8] sm:$0xff]  ;;  %364 = vmatprep.subr.mxu0 %v351_v1  ;;  %v348_v4 = vld [vmem:[#allocation5 + $0xe0] sm:$0xff]  ;;  %v347_v5 = vld [vmem:[#allocation5 + $0xd8] sm:$0xff]  ;;  %s933_s26 = sshll.u32 %s1434_s25, 9  ;;  %s809_s9 = sshll.u32 %s313_s12, 4  ;;  %s1639_s9 = int_to_ptr.vmem [resolvable:$true] %s809_s9 }
  0x6a   : > { %365 = vmatpush1.msra.mxu0 %v350_v2  ;;  %v346_v6 = vld [vmem:[#allocation5 + $0xd0] sm:$0xff]  ;;  %v345_v7 = vld [vmem:[#allocation5 + $0xc8] sm:$0xff]  ;;  %v344_v8 = vld [vmem:[#allocation5 + $0xc0] sm:$0xff]  ;;  %s1637_s8 = scalar_lea.hbm %s1688_s6, %s933_s26  ;;  %s796_s20 = scalar_lea.sflag [#allocation4], %s1557_s17 }
  0x6b   : > { %366 = vmatprep.subr.mxu0 %v349_v3  ;;  %v343_v9 = vld [vmem:[#allocation5 + $0xb8] sm:$0xff]  ;;  %v342_v10 = vld [vmem:[#allocation5 + $0xb0] sm:$0xff]  ;;  %v341_v11 = vld [vmem:[#allocation5 + $0xa8] sm:$0xff]  ;;  %s1292_s18 = scalar_lea.vmem %s1639_s9, 512  ;;  %p1710_p0 = scmp.ne.s32.totalorder %s1700_s14, 0 }
  0x6c   : > { %367 = vmatpush1.msra.mxu0 %v348_v4  ;;  %v340_v12 = vld [vmem:[#allocation5 + $0xa0] sm:$0xff]  ;;  %v339_v13 = vld [vmem:[#allocation5 + $0x98] sm:$0xff]  ;;  %v338_v14 = vld [vmem:[#allocation5 + $0x90] sm:$0xff]  ;;  %p1293_p12 = scmp.ne.s32.totalorder %s1639_s9, %s1292_s18  ;;  %s1375_s25 = smov [#allocation10]  }
  0x6d   : > { %368 = vmatprep.subr.mxu0 %v347_v5  ;;  %v337_v15 = vld [vmem:[#allocation5 + $0x88] sm:$0xff]  ;;  %v492_v16 = vld [vmem:[#allocation7 + $0xf8] sm:$0xff]  ;;  %v491_v18 = vld [vmem:[#allocation7 + $0xf0] sm:$0xff]  ;;  %s1296_s19 = sshll.u32 %s1375_s25, 4  ;;  %s1297_s19 = int_to_ptr.vmem [resolvable:$false] %s1296_s19 }
  0x6e   : > { %369 = vmatpush1.msra.mxu0 %v346_v6  ;;  %v476_v17 = vld [vmem:[#allocation7 + $0x78] sm:$0xff]  ;;  %v336_v19 = vld [vmem:[#allocation5 + $0x80] sm:$0xff]  ;;  %934 = vmatprep.subr.mxu1 %v492_v16  ;;  %v475_v20 = vld [vmem:[#allocation7 + $0x70] sm:$0xff]  ;;  %p1294_p5 = pnand %p1293_p12, %p1710_p0  ;;  %p1299_p1 = scmp.lt.s32.totalorder %s1639_s9, %s1297_s19 }
  0x6f   : > { %370 = vmatprep.subr.mxu0 %v345_v7  ;;  %v335_v21 = vld [vmem:[#allocation5 + $0x78] sm:$0xff]  ;;  %935 = vmatpush3.msra.mxu1 %v476_v17  ;;  %v490_v22 = vld [vmem:[#allocation7 + $0xe8] sm:$0xff]  ;;  %v334_v23 = vld [vmem:[#allocation5 + $0x70] sm:$0xff] }
  0x70   : > { %371 = vmatpush1.msra.mxu0 %v344_v8  ;;  %936 = vmatprep.subr.mxu1 %v491_v18  ;;  %v474_v24 = vld [vmem:[#allocation7 + $0x68] sm:$0xff]  ;;  %v489_v26 = vld [vmem:[#allocation7 + $0xe0] sm:$0xff]  ;;  %v331_v29 = vld [vmem:[#allocation5 + $0x58] sm:$0xff]  ;;  %p1295_p10 = pneg %p1294_p5 }
  0x71   : > { %372 = vmatprep.subr.mxu0 %v343_v9  ;;  %v333_v25 = vld [vmem:[#allocation5 + $0x68] sm:$0xff]  ;;  %937 = vmatpush3.msra.mxu1 %v475_v20  ;;  %v332_v27 = vld [vmem:[#allocation5 + $0x60] sm:$0xff]  ;;  %v488_v30 = vld [vmem:[#allocation7 + $0xd8] sm:$0xff] }
  0x72   : > { %373 = vmatpush1.msra.mxu0 %v342_v10  ;;  %938 = vmatprep.subr.mxu1 %v490_v22  ;;  %v473_v28 = vld [vmem:[#allocation7 + $0x60] sm:$0xff]  ;;  %v330_v31 = vld [vmem:[#allocation5 + $0x50] sm:$0xff]  ;;  %v472_v32 = vld [vmem:[#allocation7 + $0x58] sm:$0xff] }
  0x73   : > { %374 = vmatprep.subr.mxu0 %v341_v11  ;;  %939 = vmatpush3.msra.mxu1 %v474_v24  ;;  %v329_v33 = vld [vmem:[#allocation5 + $0x48] sm:$0xff]  ;;  %v487_v34 = vld [vmem:[#allocation7 + $0xd0] sm:$0xff]  ;;  %v328_v35 = vld [vmem:[#allocation5 + $0x40] sm:$0xff] }
  0x74   : > { %375 = vmatpush1.msra.mxu0 %v340_v12  ;;  %940 = vmatprep.subr.mxu1 %v489_v26  ;;  %v471_v36 = vld [vmem:[#allocation7 + $0x50] sm:$0xff]  ;;  %v327_v37 = vld [vmem:[#allocation5 + $0x38] sm:$0xff]  ;;  %v486_v38 = vld [vmem:[#allocation7 + $0xc8] sm:$0xff] }
  0x75   : > { %376 = vmatprep.subr.mxu0 %v339_v13  ;;  %941 = vmatpush3.msra.mxu1 %v473_v28  ;;  %v326_v39 = vld [vmem:[#allocation5 + $0x30] sm:$0xff]  ;;  %v470_v40 = vld [vmem:[#allocation7 + $0x48] sm:$0xff]  ;;  %v485_v42 = vld [vmem:[#allocation7 + $0xc0] sm:$0xff] }
  0x76   : > { %377 = vmatpush1.msra.mxu0 %v338_v14  ;;  %942 = vmatprep.subr.mxu1 %v488_v30  ;;  %v325_v41 = vld [vmem:[#allocation5 + $0x28] sm:$0xff]  ;;  %v324_v43 = vld [vmem:[#allocation5 + $0x20] sm:$0xff]  ;;  %v323_v45 = vld [vmem:[#allocation5 + $0x18] sm:$0xff] }
  0x77   : > { %378 = vmatprep.subr.mxu0 %v337_v15  ;;  %943 = vmatpush3.msra.mxu1 %v472_v32  ;;  %v469_v44 = vld [vmem:[#allocation7 + $0x40] sm:$0xff]  ;;  %v484_v46 = vld [vmem:[#allocation7 + $0xb8] sm:$0xff]  ;;  %v322_v47 = vld [vmem:[#allocation5 + $0x10] sm:$0xff]  ;;  %v354_v15 = vlaneseq }
  0x78   : > { %379 = vmatpush1.msra.mxu0 %v336_v19  ;;  %944 = vmatprep.subr.mxu1 %v487_v34  ;;  %v468_v48 = vld [vmem:[#allocation7 + $0x38] sm:$0xff]  ;;  %v321_v49 = vld [vmem:[#allocation5 + $0x8] sm:$0xff]  ;;  %v483_v50 = vld [vmem:[#allocation7 + $0xb0] sm:$0xff] }
  0x79   : > { %380 = vmatprep.subr.mxu0 %v335_v21  ;;  %945 = vmatpush3.msra.mxu1 %v471_v36  ;;  %v320_v51 = vld [vmem:[#allocation5] sm:$0xff]  ;;  %v467_v52 = vld [vmem:[#allocation7 + $0x30] sm:$0xff]  ;;  %v482_v54 = vld [vmem:[#allocation7 + $0xa8] sm:$0xff]  ;;  %v355_v16 = vshrl.u32 %v354_v15, 7 }
  0x7a   : > { %381 = vmatpush1.msra.mxu0 %v334_v23  ;;  %946 = vmatprep.subr.mxu1 %v486_v38  ;;  %v1579_v53 = vld [vmem:[%s1563_s11] sm:$0xff]  ;;  %v466_v55 = vld [vmem:[#allocation7 + $0x28] sm:$0xff]  ;;  %v1589_v59 = vld [vmem:[%s1563_s11 + $0x10] sm:$0xff] }
  0x7b   : > { %382 = vmatprep.subr.mxu0 %v333_v25  ;;  %947 = vmatpush3.msra.mxu1 %v470_v40  ;;  %v481_v56 = vld [vmem:[#allocation7 + $0xa0] sm:$0xff]  ;;  %v1584_v58 = vld [vmem:[%s1563_s11 + $0x8] sm:$0xff]  ;;  %v1594_v60 = vld [vmem:[%s1563_s11 + $0x18] sm:$0xff]  ;;  %v356_v17 = vsub.s32 0, %v355_v16  ;;  %v360_v19 = vsub.s32 1, %v355_v16  ;;  %s1298_s11 = scalar_lea.vmem %s1297_s19, 1024 }
  0x7c   : > { %383 = vmatpush1.msra.mxu0 %v332_v27  ;;  %948 = vmatprep.subr.mxu1 %v485_v42  ;;  %v465_v57 = vld [vmem:[#allocation7 + $0x20] sm:$0xff]  ;;  %v480_v61 = vld [vmem:[#allocation7 + $0x98] sm:$0xff]  ;;  %v479_v63 = vld [vmem:[#allocation7 + $0x90] sm:$0xff]  ;;  %p1300_p2 = scmp.lt.s32.totalorder %s1298_s11, %s1292_s18 }
  0x7d   : > { %384 = vmatprep.subr.mxu0 %v331_v29  ;;  %949 = vmatpush3.msra.mxu1 %v469_v44  ;;  %v464_v62 = vld [vmem:[#allocation7 + $0x18] sm:$0xff]  ;;  %v463_v1 = vld [vmem:[#allocation7 + $0x10] sm:$0xff]  ;;  %v478_v2 = vld [vmem:[#allocation7 + $0x88] sm:$0xff] }
  0x7e   : > { %385 = vmatpush1.msra.mxu0 %v330_v31  ;;  %950 = vmatprep.subr.mxu1 %v484_v46  ;;  %v462_v3 = vld [vmem:[#allocation7 + $0x8] sm:$0xff]  ;;  %v477_v4 = vld [vmem:[#allocation7 + $0x80] sm:$0xff]  ;;  %v603_v6 = vld [vmem:[#allocation8 + $0x70] sm:$0xff]  ;;  %p1301_p3 = por %p1300_p2, %p1299_p1 }
  0x7f   : > { %386 = vmatprep.subr.mxu0 %v329_v33  ;;  %951 = vmatpush3.msra.mxu1 %v468_v48  ;;  %v461_v5 = vld [vmem:[#allocation7] sm:$0xff]  ;;  %v602_v7 = vld [vmem:[#allocation8 + $0x68] sm:$0xff]  ;;  %v1597_v9 = vld [vmem:[#allocation8 + $0x58] sm:$0xff] }
  0x80   : > { %387 = vmatpush1.msra.mxu0 %v328_v35  ;;  %952 = vmatprep.subr.mxu1 %v483_v50  ;;  %v601_v8 = vld [vmem:[#allocation8 + $0x60] sm:$0xff]  ;;  %v1599_v10 = vld [vmem:[#allocation8 + $0x50] sm:$0xff]  ;;  %v1603_v11 = vld [vmem:[#allocation8 + $0x48] sm:$0xff]  ;;  %p1302_p9 = pnand %p1301_p3, %p1295_p10 }
  0x81   : > { %388 = vmatprep.subr.mxu0 %v327_v37  ;;  %953 = vmatpush3.msra.mxu1 %v467_v52  ;;  %v1607_v12 = vld [vmem:[#allocation8 + $0x40] sm:$0xff]  ;;  %v596_v13 = vld [vmem:[#allocation8 + $0x38] sm:$0xff]  ;;  %v595_v14 = vld [vmem:[#allocation8 + $0x30] sm:$0xff] }
  0x82   : > { %389 = vmatpush1.msra.mxu0 %v326_v39  ;;  %954 = vmatprep.subr.mxu1 %v482_v54  ;;  %v352_v18 = vld [vmem:[%s1684_s2] sm:$0x3]  ;;  %v594_v46 = vld [vmem:[#allocation8 + $0x28] sm:$0xff]  ;;  %v592_v48 = vld [vmem:[#allocation8 + $0x18] sm:$0xff] }
  0x83   : > { %390 = vmatprep.subr.mxu0 %v325_v41  ;;  %955 = vmatpush3.msra.mxu1 %v466_v55  ;;  %v357_v20 = vrot.slane %v352_v18, %v356_v17  ;;  %v361_v21 = vrot.slane %v352_v18, %v360_v19  ;;  %v590_v50 = vld [vmem:[#allocation8 + $0x8] sm:$0xff]  ;;  %v926_v54 = vld [vmem:[%s1686_s4] ss:$0 sm:$0xff] }
  0x84   : > { %391 = vmatpush1.msra.mxu0 %v324_v43  ;;  %956 = vmatprep.subr.mxu1 %v481_v56 }
  0x85   : > { %392 = vmatprep.subr.mxu0 %v323_v45  ;;  %957 = vmatpush3.msra.mxu1 %v465_v57 }
  0x86   : > { %393 = vmatpush1.msra.mxu0 %v322_v47  ;;  %958 = vmatprep.subr.mxu1 %v480_v61  ;;  %v593_v47 = vld [vmem:[#allocation8 + $0x20] sm:$0xff] }
  0x87   : > { %394 = vmatprep.subr.mxu0 %v321_v49  ;;  %959 = vmatpush3.msra.mxu1 %v464_v62  ;;  %v591_v49 = vld [vmem:[#allocation8 + $0x10] sm:$0xff] }
  0x88   : > { %395 = vmatpush1.msra.mxu0 %v320_v51  ;;  %960 = vmatprep.subr.mxu1 %v479_v63  ;;  %v589_v51 = vld [vmem:[#allocation8] sm:$0xff] }
  0x89   : > { %429 = vmatmul.mubr.f32.vlgmr.msra.gmra.mxu0 %v1579_v53  ;;  %961 = vmatpush3.msra.mxu1 %v463_v1 }
  0x8a   : > { %434 = vmatprep.mubr.f32.mxu0 %v1374_v0  ;;  %962 = vmatprep.subr.mxu1 %v478_v2 }
  0x8b   : > { %963 = vmatpush3.msra.mxu1 %v462_v3 }
  0x8c   : > { %964 = vmatprep.subr.mxu1 %v477_v4 }
  0x8d   : > { %435 = vmatmul.mubr.f32.gmra.mxu0 %v1584_v58  ;;  %965 = vmatpush3.msra.mxu1 %v461_v5 }
  0x8e   : > { %440 = vmatprep.mubr.f32.mxu0 %v1374_v0 }
  0x91   : > { %441 = vmatmul.mubr.f32.gmra.mxu0 %v1589_v59 }
  0x92   : > { %446 = vmatprep.mubr.f32.mxu0 %v1374_v0  ;;  %v604_v0 = vld [vmem:[#allocation8 + $0x78] sm:$0xff] }
  0x93   : > { %1018 = vmatprep.subr.mxu0 %v604_v0  ;;  %1056 = vmatprep.subr.mxu1 %v604_v0 }
  0x94   : > { %1019 = vmatpush3.msra.mxu0 %v604_v0 }
  0x95   : > { %447 = vmatmul.mubr.f32.gmra.mxu0 %v1594_v60  ;;  %1020 = vmatprep.subr.mxu0 %v603_v6 }
  0x96   : > { %1021 = vmatpush3.msra.mxu0 %v603_v6 }
  0x97   : > { %1022 = vmatprep.subr.mxu0 %v602_v7 }
  0x98   : > { %1023 = vmatpush3.msra.mxu0 %v602_v7 }
  0x99   : > { %1024 = vmatprep.subr.mxu0 %v601_v8 }
  0x9a   : > { %1025 = vmatpush3.msra.mxu0 %v601_v8 }
  0x9b   : > { %1026 = vmatprep.subr.mxu0 %v1597_v9 }
  0x9c   : > { %1027 = vmatpush3.msra.mxu0 %v1597_v9 }
  0x9d   : > { %1028 = vmatprep.subr.mxu0 %v1599_v10 }
  0x9e   : > { %1029 = vmatpush3.msra.mxu0 %v1599_v10 }
  0x9f   : > { %1030 = vmatprep.subr.mxu0 %v1603_v11 }
  0xa0   : > { %1031 = vmatpush3.msra.mxu0 %v1603_v11 }
  0xa1   : > { %1032 = vmatprep.subr.mxu0 %v1607_v12 }
  0xa2   : > { %1033 = vmatpush3.msra.mxu0 %v1607_v12 }
  0xa3   : > { %1034 = vmatprep.subr.mxu0 %v596_v13 }
  0xa4   : > { %1035 = vmatpush3.msra.mxu0 %v596_v13 }
  0xa5   : > { %1036 = vmatprep.subr.mxu0 %v595_v14 }
  0xa6   : > { %1037 = vmatpush3.msra.mxu0 %v595_v14 }
  0xa7   : > { %1038 = vmatprep.subr.mxu0 %v594_v46 }
  0xa8   : > { %1039 = vmatpush3.msra.mxu0 %v594_v46 }
  0xa9   : > { %1040 = vmatprep.subr.mxu0 %v593_v47 }
  0xaa   : > { %1041 = vmatpush3.msra.mxu0 %v593_v47 }
  0xab   : > { %1042 = vmatprep.subr.mxu0 %v592_v48 }
  0xac   : > { %1043 = vmatpush3.msra.mxu0 %v592_v48 }
  0xad   : > { %1044 = vmatprep.subr.mxu0 %v591_v49 }
  0xae   : > { %1045 = vmatpush3.msra.mxu0 %v591_v49 }
  0xaf   : > { %1046 = vmatprep.subr.mxu0 %v590_v50 }
  0xb0   : > { %1047 = vmatpush3.msra.mxu0 %v590_v50 }
  0xb1   : > { %1048 = vmatprep.subr.mxu0 %v589_v51 }
  0xb2   : > { %1049 = vmatpush3.msra.mxu0 %v589_v51 }
 0x149   : > { %v430_v22 = vpop.f32.mrf.mxu0 }
 0x14a   : > { %v431_v23 = vadd.f32 %v430_v22, %v357_v20 }
 0x14b   : > { %v432_v24 = vpop.f32.mrf.mxu0 }
 0x14c   : > { %v433_v25 = vadd.f32 %v432_v24, %v361_v21  ;;  %v453_v28 = vmax.f32 %v431_v23, 0.0 }
 0x14d   : > { %v436_v26 = vpop.f32.mrf.mxu0 }
 0x14e   : > { %v454_v27 = vmax.f32 %v433_v25, 0.0  ;;  %v437_v29 = vadd.f32 %v436_v26, %v357_v20 }
 0x14f   : > { %v438_v30 = vpop.f32.mrf.mxu0 }
 0x150   : > { %v439_v31 = vadd.f32 %v438_v30, %v361_v21  ;;  %564 = vmatprep.mubr.f32.mxu1 %v454_v27  ;;  %v455_v34 = vmax.f32 %v437_v29, 0.0 }
 0x151   : > { %v442_v32 = vpop.f32.mrf.mxu0  ;;  %565 = vmatmul.mubr.f32.vlgmr.msra.gmra.mxu1 %v453_v28 }
 0x152   : > { %v456_v33 = vmax.f32 %v439_v31, 0.0  ;;  %1057 = vmatpush3.msra.mxu1 %v604_v0  ;;  %v443_v35 = vadd.f32 %v442_v32, %v357_v20 }
 0x153   : > { %v444_v36 = vpop.f32.mrf.mxu0  ;;  %1058 = vmatprep.subr.mxu1 %v603_v6 }
 0x154   : > { %v445_v37 = vadd.f32 %v444_v36, %v361_v21  ;;  %569 = vmatprep.mubr.f32.mxu1 %v456_v33  ;;  %1059 = vmatpush3.msra.mxu1 %v603_v6  ;;  %v457_v40 = vmax.f32 %v443_v35, 0.0 }
 0x155   : > { %v448_v38 = vpop.f32.mrf.mxu0  ;;  %570 = vmatmul.mubr.f32.gmra.mxu1 %v455_v34  ;;  %1060 = vmatprep.subr.mxu1 %v602_v7 }
 0x156   : > { %v458_v39 = vmax.f32 %v445_v37, 0.0  ;;  %1061 = vmatpush3.msra.mxu1 %v602_v7  ;;  %v449_v41 = vadd.f32 %v448_v38, %v357_v20 }
 0x157   : > { %v450_v42 = vpop.f32.mrf.mxu0  ;;  %1062 = vmatprep.subr.mxu1 %v601_v8 }
 0x158   : > { %v451_v43 = vadd.f32 %v450_v42, %v361_v21  ;;  %574 = vmatprep.mubr.f32.mxu1 %v458_v39  ;;  %1063 = vmatpush3.msra.mxu1 %v601_v8  ;;  %v459_v45 = vmax.f32 %v449_v41, 0.0 }
 0x159   : > { %575 = vmatmul.mubr.f32.gmra.mxu1 %v457_v40  ;;  %1064 = vmatprep.subr.mxu1 %v1597_v9 }
 0x15a   : > { %v460_v44 = vmax.f32 %v451_v43, 0.0  ;;  %1065 = vmatpush3.msra.mxu1 %v1597_v9 }
 0x15b   : > { %1066 = vmatprep.subr.mxu1 %v1599_v10 }
 0x15c   : > { %579 = vmatprep.mubr.f32.mxu1 %v460_v44  ;;  %1067 = vmatpush3.msra.mxu1 %v1599_v10 }
 0x15d   : > { %580 = vmatmul.mubr.f32.gmra.mxu1 %v459_v45  ;;  %1068 = vmatprep.subr.mxu1 %v1603_v11 }
 0x15e   : > { %1069 = vmatpush3.msra.mxu1 %v1603_v11 }
 0x15f   : > { %1070 = vmatprep.subr.mxu1 %v1607_v12 }
 0x160   : > { %1071 = vmatpush3.msra.mxu1 %v1607_v12 }
 0x161   : > { %1072 = vmatprep.subr.mxu1 %v596_v13 }
 0x162   : > { %1073 = vmatpush3.msra.mxu1 %v596_v13 }
 0x163   : > { %1074 = vmatprep.subr.mxu1 %v595_v14 }
 0x164   : > { %1075 = vmatpush3.msra.mxu1 %v595_v14 }
 0x165   : > { %1076 = vmatprep.subr.mxu1 %v594_v46 }
 0x166   : > { %1077 = vmatpush3.msra.mxu1 %v594_v46 }
 0x167   : > { %1078 = vmatprep.subr.mxu1 %v593_v47 }
 0x168   : > { %1079 = vmatpush3.msra.mxu1 %v593_v47 }
 0x169   : > { %1080 = vmatprep.subr.mxu1 %v592_v48 }
 0x16a   : > { %1081 = vmatpush3.msra.mxu1 %v592_v48 }
 0x16b   : > { %1082 = vmatprep.subr.mxu1 %v591_v49 }
 0x16c   : > { %1083 = vmatpush3.msra.mxu1 %v591_v49 }
 0x16d   : > { %1084 = vmatprep.subr.mxu1 %v590_v50 }
 0x16e   : > { %1085 = vmatpush3.msra.mxu1 %v590_v50 }
 0x16f   : > { %1086 = vmatprep.subr.mxu1 %v589_v51 }
 0x170   : > { %1087 = vmatpush3.msra.mxu1 %v589_v51 }
 0x211   : > { %v966_v52 = vpop.f32.mrf.mxu1 }
 0x213   : > { %v967_v55 = vpop.f32.mrf.mxu1 }
 0x214   : > { %v968_v56 = vadd.f32 %v967_v55, %v966_v52 }
 0x215   : > { %v969_v57 = vpop.f32.mrf.mxu1 }
 0x216   : > { %v567_v61 = vadd.f32 %v968_v56, %v926_v54 }
 0x217   : > { %v970_v62 = vpop.f32.mrf.mxu1 }
 0x218   : > { %v971_v63 = vadd.f32 %v970_v62, %v969_v57  ;;  %v585_v1 = vadd.f32 %v567_v61, %v1579_v53 }
 0x219   : > { %v972_v2 = vpop.f32.mrf.mxu1 }
 0x21a   : > { %v572_v3 = vadd.f32 %v971_v63, %v926_v54  ;;  %1050 = vmatprep.mubr.f32.mxu0 %v585_v1 }
 0x21b   : > { %v973_v4 = vpop.f32.mrf.mxu1 }
 0x21c   : > { %v586_v5 = vadd.f32 %v572_v3, %v1584_v58  ;;  %v974_v0 = vadd.f32 %v973_v4, %v972_v2 }
 0x21d   : > { %v975_v6 = vpop.f32.mrf.mxu1 }
 0x21e   : > { %v577_v7 = vadd.f32 %v974_v0, %v926_v54  ;;  %1051 = vmatmul.mubr.f32.vlgmr.msra.gmra.mxu0 %v586_v5 }
 0x21f   : > { %v976_v8 = vpop.f32.mrf.mxu1 }
 0x220   : > { %v977_v9 = vadd.f32 %v976_v8, %v975_v6  ;;  %v587_v10 = vadd.f32 %v577_v7, %v1589_v59 }
 0x222   : > { %v582_v11 = vadd.f32 %v977_v9, %v926_v54  ;;  %1053 = vmatprep.mubr.f32.mxu0 %v587_v10 }
 0x224   : > { %v588_v12 = vadd.f32 %v582_v11, %v1594_v60 }
 0x226   : > { %1054 = vmatmul.mubr.f32.gmra.mxu0 %v588_v12 }
 0x2de   : > { %v1052_v53 = vpop.f32.mrf.mxu0 }
 0x2df   : > { %v691_v13 = vsub.f32 %v586_v5, %v1052_v53 }
 0x2e0   : > { %v671_v14 = vpop.f32.mrf.mxu0 }
 0x2e1   : > { %v690_v15 = vsub.f32 %v585_v1, %v671_v14  ;;  %v695_v17 = vmul.f32 %v691_v13, %v691_v13 }
 0x2e3   : > { %v694_v16 = vmul.f32 %v690_v15, %v690_v15 }
 0x2e5   : > { %1088 = vmatprep.mubr.f32.mxu1 %v694_v16 }
 0x2e6   : > { %v1055_v58 = vpop.f32.mrf.mxu0  ;;  %1089 = vmatmul.mubr.f32.vlgmr.msra.gmra.mxu1 %v695_v17 }
 0x2e7   : > { %v693_v18 = vsub.f32 %v588_v12, %v1055_v58 }
 0x2e8   : > { %v681_v19 = vpop.f32.mrf.mxu0 }
 0x2e9   : > { %v692_v20 = vsub.f32 %v587_v10, %v681_v19  ;;  %v697_v22 = vmul.f32 %v693_v18, %v693_v18 }
 0x2eb   : > { %v696_v21 = vmul.f32 %v692_v20, %v692_v20 }
 0x2ed   : > { %1091 = vmatprep.mubr.f32.mxu1 %v696_v21 }
 0x2ee   : > { %1092 = vmatmul.mubr.f32.gmra.mxu1 %v697_v22 }
 0x3a6   : > { %v1090_v59 = vpop.f32.mrf.mxu1 }
 0x3a7   : > { %v770_v60 = vadd.f32 1e-05, %v1090_v59 }
 0x3a8   : > { %v764_v23 = vpop.f32.mrf.mxu1 }
 0x3a9   : > { %1178 = vrsqrt.f32 %v770_v60  ;;  %v765_v24 = vadd.f32 1e-05, %v764_v23 }
 0x3ab   : > { %1180 = vrsqrt.f32 %v765_v24 }
 0x3ae   : > { %v1093_v25 = vpop.f32.mrf.mxu1 }
 0x3af   : > { %v780_v26 = vadd.f32 1e-05, %v1093_v25 }
 0x3b0   : > { %v774_v27 = vpop.f32.mrf.mxu1 }
 0x3b1   : > { %1182 = vrsqrt.f32 %v780_v26  ;;  %v775_v28 = vadd.f32 1e-05, %v774_v27 }
 0x3b3   : > { %1184 = vrsqrt.f32 %v775_v28 }
 0x3b6   : > { %v1179_v29 = vpop.eup %1178 }
 0x3b7   : > { %v788_v30 = vmul.f32 %v1179_v29, %v691_v13 }
 0x3b8   : > { %v1181_v31 = vpop.eup %1180 }
 0x3b9   : > { %792 = vst [vmem:[%s313_s12 + $0x8] sm:$0xff] %v788_v30  ;;  %v787_v32 = vmul.f32 %v1181_v31, %v690_v15 }
 0x3bb   : > { %791 = vst [vmem:[%s313_s12] sm:$0xff] %v787_v32 }
 0x3be   : > { %v1183_v33 = vpop.eup %1182 }
 0x3bf   : > { %v790_v34 = vmul.f32 %v1183_v33, %v693_v18 }
 0x3c0   : > { %v1185_v35 = vpop.eup %1184 }
 0x3c1   : > { %794 = vst [vmem:[%s313_s12 + $0x18] sm:$0xff] %v790_v34  ;;  %v789_v36 = vmul.f32 %v1185_v35, %v692_v20 }
 0x3c3   : > { %793 = vst [vmem:[%s313_s12 + $0x10] sm:$0xff] %v789_v36 }
 0x3c4   : > { %1305 = shalt.err (!%p1302_p9)
}
 0x3c5   : > { %s1306_s27 = scalar_lea.hbm %s1637_s8, 512  ;;  %s1310_s10 = scalar_lea.hbm %s1688_s6, 1024 }
 0x3c6   : > { %p1307_p7 = scmp.ne.s32.totalorder %s1637_s8, %s1306_s27  ;;  %p1311_p6 = scmp.lt.s32.totalorder %s1637_s8, %s1688_s6 }
 0x3c7   : > { %p1312_p11 = scmp.lt.s32.totalorder %s1310_s10, %s1306_s27 }
 0x3c8   : > { %p1308_p4 = pnand %p1307_p7, %p1710_p0 }
 0x3c9   : > { %p1313_p13 = por %p1312_p11, %p1311_p6 }
 0x3ca   : > { %p1309_p8 = pneg %p1308_p4 }
 0x3cc   : > { %p1314_p12 = pnand %p1313_p13, %p1309_p8 }
 0x3ce   : > { %1317 = shalt.err (!%p1314_p12)
}
 0x3cf   : > { %s1376_s15 = smov 128   ;;  %s1377_s16 = smov 8  }
 0x3d0   : > { %1108 = dma.vmem_to_hbm [thread:$0]  (%p1710_p0), %s1639_s9, 512, %s1637_s8, %s796_s20, %s1376_s15, %s1376_s15, %s1377_s16  }
 0x3d1 PF: > { %s824_s18 = sand.u32 1, %s1352_s21   ;;  %p1711_p5 = scmp.ne.s32.totalorder %s1696_s28, 0 }
 0x3d2   : > { %p1712_p10 = scmp.ge.s32.totalorder %s1364_s24, 2  ;;  %s825_s25 = scalar_lea.sflag [#allocation4], %s824_s18 }
 0x3d4   : > { %p1125_p1 = pnand %p1712_p10, %p1711_p5 }
 0x3d6   : > { %p1126_p2 = pneg %p1125_p1 }
 0x3d8   : > { %1347 = dma.done.wait (%p1126_p2), %s825_s25, 512  }
 0x3d9   : > { %1349 = vsyncadd (%p1126_p2), %s825_s25, 4294966784  ;;  %p21_p3 = scmp.ge.s32.totalorder %s1488_s7, 4   ;;  %s1713_s21 = smov %s1356_s22 }
 0x3da   : > { %s1714_s22 = smov %s1360_s23  ;;  %s1715_s23 = smov %s1509_s13 }
 0x3db   : > { %s1716_s24 = smov %s1488_s7  ;;  %23 = sbr.rel (!%p21_p3) target bundleno = 7 (0x7), region = 101 }
 0x3e0   :  { %830 = vsyncpa [#allocation3], 1 }
 0x3e1   :  { %832 = vsyncpa [#allocation3 + $0x1], 1 }
 0x3e2   :  { %833 = vsyncpa [#allocation6], 1 }
 0x3e3   :  { %834 = vsyncpa [#allocation9], 1 }
 0x3e4   :  { %835 = vsyncpa [#allocation4], 1 }
 0x3e5   :  { %837 = vsyncpa [#allocation4 + $0x1], 1 }

</bundles_post_ra>
